<compile_context>
chip_gen: v7x
topology: tpu7x:2x2x1
jax: 0.10.0
libtpu: 0.0.40
codegen_flags: <defaults>
</compile_context>

<pallas_src>
import jax
import jax.numpy as jnp
from jax.experimental import pallas as pl
from jax.experimental.pallas import tpu as pltpu

_LANE = 128              # batch tiles are multiples of the lane width
_SPLIT_MIN_ROWS = 512    # min rows/tile before splitting a fitting batch into 2 tiles


def _round_up(x, m):
    return ((x + m - 1) // m) * m


def _critic_kernel(xt_ref, w1_ref, b1_ref, w2_ref, b2_ref, w3_ref, b3_ref, o_ref):
    """One batch tile of the fused 3-layer critic MLP (feature-major layout).

    xt_ref : [IN, TB]   concatenated (state||action), transposed; caller dtype
    w1_ref : [H, IN]    layer-1 weight (PyTorch [out, in] orientation), matmul dtype
    b1_ref : [H, 1]     f32
    w2_ref : [H, H]     matmul dtype
    b2_ref : [H, 1]     f32
    w3_ref : [H, 1]     f32 (out_features == 1 head)
    b3_ref : [1]        f32 scalar in SMEM
    o_ref  : [1, 1, TB] lane-dense packed output row for this tile
    """
    md = w1_ref.dtype
    xt = xt_ref[...].astype(md)          # in-kernel cast (VPU, hidden under the matmul)

    # Layer 1: single K=IN MXU matmul, f32 accumulation, bias/ReLU in f32.
    h1 = jnp.dot(w1_ref[...], xt, preferred_element_type=jnp.float32) + b1_ref[...]
    h1 = jnp.maximum(h1, 0.0)            # [H, TB] f32

    # Layer 2.
    h2 = jnp.dot(w2_ref[...], h1.astype(md),
                 preferred_element_type=jnp.float32) + b2_ref[...]
    h2 = jnp.maximum(h2, 0.0)            # [H, TB] f32

    # Layer 3 (out_features == 1): VPU multiply + sublane reduction -> result is
    # already lane-dense along the batch; no MXU N=1 pop, no relayout needed.
    val = jnp.sum(h2 * w3_ref[...], axis=0, keepdims=True) + b3_ref[0]   # [1, TB]

    o_ref[...] = val[None].astype(o_ref.dtype)                            # [1, 1, TB]


def critic_forward(state, action, params, *, matmul_dtype=jnp.bfloat16, tb_max=2048):
    """Fused critic forward.

    params = (w1, b1, w2, b2, w3, b3); weights stored transposed [in, out]
    (PyTorch y = x @ W^T + b), biases as [1, out].
    """
    w1, b1, w2, b2, w3, b3 = params
    B, S = state.shape
    A = action.shape[1]
    in_size, H = w1.shape
    assert S + A == in_size
    assert w3.shape[1] == 1, "kernel implements the scalar-output critic head"
    assert tb_max % _LANE == 0 and tb_max >= _LANE

    # ---- operand prep (one-time, tiny) ------------------------------------
    md = matmul_dtype
    w1t = w1.T.astype(md)                       # [H, IN]
    w2t = w2.T.astype(md)                       # [H, H]
    b1c = b1.reshape(H, 1).astype(jnp.float32)  # [H, 1]
    b2c = b2.reshape(H, 1).astype(jnp.float32)  # [H, 1]
    w3c = w3.reshape(H, 1).astype(jnp.float32)  # [H, 1]
    b3f = b3.reshape(1).astype(jnp.float32)     # [1]  -> SMEM scalar

    # ---- batch tiling ------------------------------------------------------
    b_pad = _round_up(B, _LANE)
    if b_pad > tb_max:
        num_tiles = pl.cdiv(b_pad, tb_max)
    elif b_pad >= 2 * _SPLIT_MIN_ROWS:
        num_tiles = 2        # keep both v7x TensorCores busy; ~free on v5e/v6e
    else:
        num_tiles = 1
    tb = _round_up(pl.cdiv(b_pad, num_tiles), _LANE)
    b_pad = tb * num_tiles

    # Fused concat + transpose + pad: one wrapper pass, caller dtype preserved
    # (cast to the matmul dtype happens inside the kernel).
    xt = jnp.concatenate([state.T, action.T], axis=0)          # [IN, B]
    if b_pad != B:
        xt = jnp.pad(xt, ((0, 0), (0, b_pad - B)))              # [IN, b_pad]

    # Weights / biases: same block every grid step -> stay VMEM-resident.
    resident = lambda a: pl.BlockSpec(a.shape, lambda i: (0,) * a.ndim)

    out_pad = pl.pallas_call(
        _critic_kernel,
        out_shape=jax.ShapeDtypeStruct((num_tiles, 1, tb), jnp.float32),
        grid=(num_tiles,),
        in_specs=[
            pl.BlockSpec((in_size, tb), lambda i: (0, i)),       # input tile
            resident(w1t), resident(b1c),
            resident(w2t), resident(b2c),
            resident(w3c),
            pl.BlockSpec(memory_space=pltpu.MemorySpace.SMEM),   # b3 scalar
        ],
        out_specs=pl.BlockSpec((1, 1, tb), lambda i: (i, 0, 0)),
        compiler_params=pltpu.CompilerParams(
            dimension_semantics=("parallel",)),
    )(xt, w1t, b1c, w2t, b2c, w3c, b3f)

    # Padded rows compute garbage and are sliced off here.
    return out_pad.reshape(b_pad, 1)[:B]


def init_critic_params(key, input_size, hidden_size, output_size):
    """Deterministic init mimicking nn.Linear default (U[-1/sqrt(fan_in), +])."""
    ks = jax.random.split(key, 6)

    def linear(kw, kb, fan_in, fan_out):
        bound = 1.0 / jnp.sqrt(fan_in)
        # stored transposed: [fan_in, fan_out]
        w = jax.random.uniform(kw, (fan_in, fan_out), jnp.float32, -bound, bound)
        b = jax.random.uniform(kb, (1, fan_out), jnp.float32, -bound, bound)
        return w, b

    w1, b1 = linear(ks[0], ks[1], input_size, hidden_size)
    w2, b2 = linear(ks[2], ks[3], hidden_size, hidden_size)
    w3, b3 = linear(ks[4], ks[5], hidden_size, output_size)
    return (w1, b1, w2, b2, w3, b3)


def critic_ref(state, action, params):
    """Pure-JAX reference for correctness checking."""
    w1, b1, w2, b2, w3, b3 = params
    x = jnp.concatenate([state, action], axis=1)
    h1 = jnp.maximum(x @ w1 + b1, 0.0)
    h2 = jnp.maximum(h1 @ w2 + b2, 0.0)
    return h2 @ w3 + b3


if __name__ == "__main__":
    state_dim, action_dim = 24, 8
    input_size = state_dim + action_dim   # 32
    hidden_size = 32
    output_size = 1

    key = jax.random.PRNGKey(0)
    k_s, k_a, k_p, k_s2, k_a2 = jax.random.split(key, 5)
    params = init_critic_params(k_p, input_size, hidden_size, output_size)

    # Case 1: tiny RL-style batch, f32 MXU operands (tight check).
    B1 = 8
    state = jax.random.normal(k_s, (B1, state_dim), jnp.float32)
    action = jax.random.normal(k_a, (B1, action_dim), jnp.float32)
    out = jax.block_until_ready(
        critic_forward(state, action, params, matmul_dtype=jnp.float32))
    ref = critic_ref(state, action, params)
    assert out.shape == (B1, output_size)
    assert jnp.allclose(out, ref, atol=1e-5, rtol=1e-5), "f32 mismatch vs reference"

    # Case 2: same inputs with the default bf16 MXU operands (f32 accum / tail).
    out_bf16 = jax.block_until_ready(critic_forward(state, action, params))
    assert out_bf16.shape == (B1, output_size)
    assert jnp.allclose(out_bf16, ref, atol=5e-2, rtol=5e-2), "bf16 mismatch vs reference"

    # Case 3: ragged batch + multi-tile grid (tb_max=128 -> 3 batch tiles), f32.
    B2 = 300
    state2 = jax.random.normal(k_s2, (B2, state_dim), jnp.float32)
    action2 = jax.random.normal(k_a2, (B2, action_dim), jnp.float32)
    out2 = jax.block_until_ready(
        critic_forward(state2, action2, params, matmul_dtype=jnp.float32, tb_max=128))
    ref2 = critic_ref(state2, action2, params)
    assert out2.shape == (B2, output_size)
    assert jnp.allclose(out2, ref2, atol=1e-5, rtol=1e-5), "tiled mismatch vs reference"

    print("KERNEL_OK")
</pallas_src>

<mosaic_0001>
module attributes {stable_mosaic.version = 11 : i64} {
  func.func @_critic_kernel(%arg0: i32, %arg1: memref<32x128xf32, #tpu.memory_space<vmem>>, %arg2: memref<32x32xf32, #tpu.memory_space<vmem>>, %arg3: memref<32x1xf32, #tpu.memory_space<vmem>>, %arg4: memref<32x32xf32, #tpu.memory_space<vmem>>, %arg5: memref<32x1xf32, #tpu.memory_space<vmem>>, %arg6: memref<32x1xf32, #tpu.memory_space<vmem>>, %arg7: memref<1xf32, #tpu.memory_space<smem>>, %arg8: memref<1x1x128xf32, #tpu.memory_space<vmem>>) attributes {dimension_semantics = [#tpu.dimension_semantics<parallel>], iteration_bounds = array<i64: 1>, scalar_prefetch = 0 : i64, scratch_operands = 0 : i64, tpu.core_type = #tpu.core_type<tc>, window_params = [{transform_indices = @transform_0, window_bounds = array<i64: 32, 128>}, {pipeline_mode = #tpu.pipeline_mode<synchronous>, transform_indices = @transform_1, window_bounds = array<i64: 32, 32>}, {pipeline_mode = #tpu.pipeline_mode<synchronous>, transform_indices = @transform_2, window_bounds = array<i64: 32, 1>}, {pipeline_mode = #tpu.pipeline_mode<synchronous>, transform_indices = @transform_3, window_bounds = array<i64: 32, 32>}, {pipeline_mode = #tpu.pipeline_mode<synchronous>, transform_indices = @transform_4, window_bounds = array<i64: 32, 1>}, {pipeline_mode = #tpu.pipeline_mode<synchronous>, transform_indices = @transform_5, window_bounds = array<i64: 32, 1>}, {transform_indices = @transform_6, window_bounds = array<i64: 1>}, {transform_indices = @transform_7, window_bounds = array<i64: 1, 1, 128>}]} {
    %c0 = arith.constant 0 : index
    %c0_0 = arith.constant 0 : index
    %0 = vector.load %arg1[%c0, %c0_0] : memref<32x128xf32, #tpu.memory_space<vmem>>, vector<32x128xf32>
    %c0_1 = arith.constant 0 : index
    %c0_2 = arith.constant 0 : index
    %1 = vector.load %arg2[%c0_1, %c0_2] : memref<32x32xf32, #tpu.memory_space<vmem>>, vector<32x32xf32>
    %cst = arith.constant dense<0.000000e+00> : vector<32x128xf32>
    %2 = tpu.matmul %1, %0, %cst {dimension_numbers = #tpu.dot_dimension_numbers<[1], [0], [0], [1], [0, 0, 1, 1], [], []>} : vector<32x32xf32>, vector<32x128xf32>, vector<32x128xf32> -> vector<32x128xf32>
    %c0_3 = arith.constant 0 : index
    %c0_4 = arith.constant 0 : index
    %3 = vector.load %arg3[%c0_3, %c0_4] : memref<32x1xf32, #tpu.memory_space<vmem>>, vector<32x1xf32>
    %4 = vector.broadcast %3 : vector<32x1xf32> to vector<32x128xf32>
    %5 = arith.addf %2, %4 : vector<32x128xf32>
    %cst_5 = arith.constant 0.000000e+00 : f32
    %6 = vector.broadcast %cst_5 : f32 to vector<32x128xf32>
    %7 = arith.maximumf %5, %6 : vector<32x128xf32>
    %c0_6 = arith.constant 0 : index
    %c0_7 = arith.constant 0 : index
    %8 = vector.load %arg4[%c0_6, %c0_7] : memref<32x32xf32, #tpu.memory_space<vmem>>, vector<32x32xf32>
    %cst_8 = arith.constant dense<0.000000e+00> : vector<32x128xf32>
    %9 = tpu.matmul %8, %7, %cst_8 {dimension_numbers = #tpu.dot_dimension_numbers<[1], [0], [0], [1], [0, 0, 1, 1], [], []>} : vector<32x32xf32>, vector<32x128xf32>, vector<32x128xf32> -> vector<32x128xf32>
    %c0_9 = arith.constant 0 : index
    %c0_10 = arith.constant 0 : index
    %10 = vector.load %arg5[%c0_9, %c0_10] : memref<32x1xf32, #tpu.memory_space<vmem>>, vector<32x1xf32>
    %11 = vector.broadcast %10 : vector<32x1xf32> to vector<32x128xf32>
    %12 = arith.addf %9, %11 : vector<32x128xf32>
    %cst_11 = arith.constant 0.000000e+00 : f32
    %13 = vector.broadcast %cst_11 : f32 to vector<32x128xf32>
    %14 = arith.maximumf %12, %13 : vector<32x128xf32>
    %c0_12 = arith.constant 0 : index
    %c0_13 = arith.constant 0 : index
    %15 = vector.load %arg6[%c0_12, %c0_13] : memref<32x1xf32, #tpu.memory_space<vmem>>, vector<32x1xf32>
    %16 = vector.broadcast %15 : vector<32x1xf32> to vector<32x128xf32>
    %17 = arith.mulf %14, %16 : vector<32x128xf32>
    %cst_14 = arith.constant dense<0.000000e+00> : vector<128xf32>
    %18 = vector.multi_reduction <add>, %17, %cst_14 [0] : vector<32x128xf32> to vector<128xf32>
    %19 = vector.shape_cast %18 : vector<128xf32> to vector<1x128xf32>
    %c0_15 = arith.constant 0 : index
    %20 = memref.load %arg7[%c0_15] : memref<1xf32, #tpu.memory_space<smem>>
    %21 = vector.broadcast %20 : f32 to vector<1x128xf32>
    %22 = arith.addf %19, %21 : vector<1x128xf32>
    %23 = vector.shape_cast %22 : vector<1x128xf32> to vector<1x1x128xf32>
    %c0_16 = arith.constant 0 : index
    %c0_17 = arith.constant 0 : index
    %c0_18 = arith.constant 0 : index
    %24 = vector.load %arg8[%c0_16, %c0_17, %c0_18] : memref<1x1x128xf32, #tpu.memory_space<vmem>>, vector<1x1x128xf32>
    tpu.vector_store %arg8[%c0_16, %c0_17, %c0_18], %23 {strides = array<i32>} : memref<1x1x128xf32, #tpu.memory_space<vmem>>, vector<1x1x128xf32>,
    return
  }
  func.func @transform_0(%arg0: i32) -> (i32, i32) {
    %c0_i32 = arith.constant 0 : i32
    %c0_i32_0 = arith.constant 0 : i32
    return %c0_i32, %arg0 : i32, i32
  }
  func.func @transform_1(%arg0: i32) -> (i32, i32) {
    %c0_i32 = arith.constant 0 : i32
    %c0_i32_0 = arith.constant 0 : i32
    %c0_i32_1 = arith.constant 0 : i32
    return %c0_i32, %c0_i32_0 : i32, i32
  }
  func.func @transform_2(%arg0: i32) -> (i32, i32) {
    %c0_i32 = arith.constant 0 : i32
    %c0_i32_0 = arith.constant 0 : i32
    %c0_i32_1 = arith.constant 0 : i32
    return %c0_i32, %c0_i32_0 : i32, i32
  }
  func.func @transform_3(%arg0: i32) -> (i32, i32) {
    %c0_i32 = arith.constant 0 : i32
    %c0_i32_0 = arith.constant 0 : i32
    %c0_i32_1 = arith.constant 0 : i32
    return %c0_i32, %c0_i32_0 : i32, i32
  }
  func.func @transform_4(%arg0: i32) -> (i32, i32) {
    %c0_i32 = arith.constant 0 : i32
    %c0_i32_0 = arith.constant 0 : i32
    %c0_i32_1 = arith.constant 0 : i32
    return %c0_i32, %c0_i32_0 : i32, i32
  }
  func.func @transform_5(%arg0: i32) -> (i32, i32) {
    %c0_i32 = arith.constant 0 : i32
    %c0_i32_0 = arith.constant 0 : i32
    %c0_i32_1 = arith.constant 0 : i32
    return %c0_i32, %c0_i32_0 : i32, i32
  }
  func.func @transform_6(%arg0: i32) -> i32 {
    %c0_i32 = arith.constant 0 : i32
    %c0_i32_0 = arith.constant 0 : i32
    return %c0_i32 : i32
  }
  func.func @transform_7(%arg0: i32) -> (i32, i32, i32) {
    %c0_i32 = arith.constant 0 : i32
    %c0_i32_0 = arith.constant 0 : i32
    %c0_i32_1 = arith.constant 0 : i32
    return %arg0, %c0_i32, %c0_i32_0 : i32, i32, i32
  }
}

</mosaic_0001>

<bundles_post_ra>
// kernel: tpu_custom_call.1
= control target key start
LH: loop header
LB: loop body
LE: loop exit
PB: predicated region body
PF: predicated region fallthrough
CT: control target
= control target key end

     0   :  { %vm60_vm0 = vcmask 261120   ;;  %v442_v6 = vmov 0   ;;  %s579_s0 = inlined_call_operand.vmem [shape: f32[32,128], index: 0, kind: input, shape index: {}]   ;;  %s580_s1 = inlined_call_operand.vmem [shape: f32[32,32], index: 1, kind: input, shape index: {}]   ;;  %s581_s2 = inlined_call_operand.vmem [shape: f32[32,1], index: 2, kind: input, shape index: {}]   ;;  %s582_s3 = inlined_call_operand.vmem [shape: f32[32,32], index: 3, kind: input, shape index: {}]   ;;  %s583_s4 = inlined_call_operand.vmem [shape: f32[32,1], index: 4, kind: input, shape index: {}]   ;;  %s584_s5 = inlined_call_operand.vmem [shape: f32[32,1], index: 5, kind: input, shape index: {}]   ;;  %s585_s6 = inlined_call_operand.<no memory space> [shape: f32[1], index: 6, kind: input, shape index: {}]   ;;  %s586_s7 = inlined_call_operand.hbm [shape: f32[1,1,128], index: 7, kind: output, shape index: {}]  }
   0x1   :  { %v28_v0 = vld [vmem:[%s579_s0] sm:$0xff]  ;;  %v29_v1 = vld [vmem:[%s579_s0 + $0x8] sm:$0xff]  ;;  %v30_v2 = vld [vmem:[%s579_s0 + $0x10] sm:$0xff]  ;;  %416 = vset.pattern.permute.xlu0 %v442_v6  ;;  %417 = vset.pattern.permute.xlu1 %v442_v6 }
   0x2   :  { %v398_v3 = vpack.c.bf16 %v29_v1, %v28_v0  ;;  %v31_v4 = vld [vmem:[%s579_s0 + $0x18] sm:$0xff]  ;;  %v32_v5 = vld [vmem:[%s580_s1] sm:$0xff]  ;;  %v38_v9 = vld [vmem:[%s581_s2 + $0x10] sm:$0xff] }
   0x3   :  { %v402_v7 = vpack.c.bf16 %v31_v4, %v30_v2  ;;  %378 = vmatprep.mubr.msk.f32.mxu0 %vm60_vm0, %v32_v5  ;;  %v36_v8 = vld [vmem:[%s581_s2] sm:$0xff]  ;;  %52 = vperm.xlu1 %417, %v38_v9   ;;  %v37_v10 = vld [vmem:[%s581_s2 + $0x8] sm:$0xff]  ;;  %v39_v11 = vld [vmem:[%s581_s2 + $0x18] sm:$0xff] }
   0x4   :  { %399 = vmatprep.subr.bf16.mxu0 %v398_v3  ;;  %42 = vperm.xlu0 %416, %v36_v8  }
   0x5   :  { %401 = vmatpush3.bf16.msra.mxu0 %v398_v3 }
   0x6   :  { %403 = vmatprep.subr.bf16.mxu0 %v402_v7 }
   0x7   :  { %13 = vsyncpa [#allocation4], 0  ;;  %v33_v12 = vld [vmem:[%s580_s1 + $0x8] sm:$0xff]  ;;  %57 = vperm.xlu1 %417, %v39_v11   ;;  %v166_v13 = vld [vmem:[%s583_s4] sm:$0xff]  ;;  %s443_s21 = smov [#allocation3]  }
   0x8   :  { %47 = vperm.xlu0 %416, %v37_v10   ;;  %v34_v14 = vld [vmem:[%s580_s1 + $0x10] sm:$0xff]  ;;  %v167_v15 = vld [vmem:[%s583_s4 + $0x8] sm:$0xff]  ;;  %v35_v16 = vld [vmem:[%s580_s1 + $0x18] sm:$0xff]  ;;  %s338_s22 = sshll.u32 %s443_s21, 4  ;;  %s339_s22 = int_to_ptr.vmem [resolvable:$true] %s338_s22 }
   0x9   :  { %405 = vmatpush3.bf16.msra.mxu0 %v402_v7  ;;  %v168_v17 = vld [vmem:[%s583_s4 + $0x10] sm:$0xff]  ;;  %v169_v18 = vld [vmem:[%s583_s4 + $0x18] sm:$0xff]  ;;  %v291_v19 = vld [vmem:[%s584_s5] sm:$0xff]  ;;  %s418_s23 = scalar_lea.vmem %s339_s22, 16  ;;  %s422_s24 = scalar_lea.vmem %s339_s22, 32 }
   0xa   :  { %v292_v20 = vld [vmem:[%s584_s5 + $0x8] sm:$0xff]  ;;  %v293_v21 = vld [vmem:[%s584_s5 + $0x10] sm:$0xff]  ;;  %v294_v22 = vld [vmem:[%s584_s5 + $0x18] sm:$0xff]  ;;  %p419_p0 = scmp.ne.s32.totalorder %s339_s22, %s418_s23  ;;  %p423_p1 = scmp.lt.s32.totalorder %s339_s22, %s339_s22 }
   0xb   :  { %177 = vperm.xlu1 %417, %v167_v15   ;;  %v162_v23 = vld [vmem:[%s582_s3] sm:$0xff]  ;;  %v163_v42 = vld [vmem:[%s582_s3 + $0x8] sm:$0xff]  ;;  %v164_v43 = vld [vmem:[%s582_s3 + $0x10] sm:$0xff]  ;;  %p424_p2 = scmp.lt.s32.totalorder %s422_s24, %s418_s23 }
   0xc   :  { %379 = vmatmul.mubr.msk.f32.vlgmr.msra.gmra.mrb[0].mxu0 %vm60_vm0, %v33_v12  ;;  %172 = vperm.xlu0 %416, %v166_v13   ;;  %v165_v44 = vld [vmem:[%s582_s3 + $0x18] sm:$0xff]  ;;  %v329_v13 = vstv %s585_s6 }
   0xd   :  { %381 = vmatprep.mubr.msk.f32.mxu0 %vm60_vm0, %v34_v14  ;;  %392 = vmatprep.mubr.msk.f32.mxu1 %vm60_vm0, %v162_v23  ;;  %p425_p3 = por %p424_p2, %p423_p1 }
   0xf   :  { %187 = vperm.xlu1 %417, %v169_v18   ;;  %p426_p4 = pnand %p425_p3, %p419_p0 }
  0x10   :  { %382 = vmatmul.mubr.msk.f32.gmra.mrb[2].mxu0 %vm60_vm0, %v35_v16  ;;  %182 = vperm.xlu0 %416, %v168_v17  }
  0x13   :  { %302 = vperm.xlu1 %417, %v292_v20  }
  0x14   :  { %297 = vperm.xlu0 %416, %v291_v19  }
  0x17   :  { %312 = vperm.xlu1 %417, %v294_v22  }
  0x18   :  { %307 = vperm.xlu0 %416, %v293_v21  }
  0x82   :  { %v53_v25 = vpop.permute.xlu1 %52 }
  0x83   :  { %v43_v24 = vpop.permute.xlu0 %42 }
  0x86   :  { %v58_v32 = vpop.permute.xlu1 %57 }
  0x87   :  { %v48_v26 = vpop.permute.xlu0 %47 }
  0x8a   :  { %v178_v46 = vpop.permute.xlu1 %177 }
  0x8b   :  { %v173_v45 = vpop.permute.xlu0 %172 }
  0x8e   :  { %v188_v48 = vpop.permute.xlu1 %187 }
  0x8f   :  { %v183_v47 = vpop.permute.xlu0 %182 }
  0x92   :  { %v303_v55 = vpop.permute.xlu1 %302 }
  0x93   :  { %v298_v53 = vpop.permute.xlu0 %297 }
  0x96   :  { %v313_v4 = vpop.permute.xlu1 %312 }
  0x97   :  { %v308_v2 = vpop.permute.xlu0 %307 }
  0xdf   :  { %v380_v27 = vpop.f32.mrb[0].mxu0 }
  0xe0   :  { %v145_v28 = vadd.f32 %v380_v27, %v48_v26  ;;  %v139_v29 = vpop.f32.mrb[1].mxu0 }
  0xe1   :  { %v140_v30 = vadd.f32 %v139_v29, %v43_v24 }
  0xe2   :  { %v159_v31 = vmax.f32 %v145_v28, 0.0 }
  0xe3   :  { %v158_v33 = vmax.f32 %v140_v30, 0.0  ;;  %v383_v34 = vpop.f32.mrb[2].mxu0 }
  0xe4   :  { %v155_v35 = vadd.f32 %v383_v34, %v58_v32  ;;  %v149_v36 = vpop.f32.mrb[3].mxu0 }
  0xe5   :  { %v150_v37 = vadd.f32 %v149_v36, %v53_v25  ;;  %v406_v38 = vpack.c.bf16 %v159_v31, %v158_v33 }
  0xe6   :  { %v161_v39 = vmax.f32 %v155_v35, 0.0 }
  0xe7   :  { %v160_v40 = vmax.f32 %v150_v37, 0.0  ;;  %407 = vmatprep.subr.bf16.mxu1 %v406_v38 }
  0xe8   :  { %409 = vmatpush3.bf16.msra.mxu1 %v406_v38 }
  0xe9   :  { %v410_v41 = vpack.c.bf16 %v161_v39, %v160_v40 }
  0xeb   :  { %411 = vmatprep.subr.bf16.mxu1 %v410_v41 }
  0xec   :  { %413 = vmatpush3.bf16.msra.mxu1 %v410_v41 }
  0xef   :  { %393 = vmatmul.mubr.msk.f32.vlgmr.msra.gmra.mrb[0].mxu1 %vm60_vm0, %v163_v42 }
  0xf0   :  { %395 = vmatprep.mubr.msk.f32.mxu1 %vm60_vm0, %v164_v43 }
  0xf3   :  { %396 = vmatmul.mubr.msk.f32.gmra.mrb[2].mxu1 %vm60_vm0, %v165_v44 }
 0x1c2   :  { %v394_v49 = vpop.f32.mrb[0].mxu1 }
 0x1c3   :  { %v274_v50 = vadd.f32 %v394_v49, %v178_v46  ;;  %v268_v51 = vpop.f32.mrb[1].mxu1 }
 0x1c4   :  { %v269_v52 = vadd.f32 %v268_v51, %v173_v45 }
 0x1c5   :  { %v288_v54 = vmax.f32 %v274_v50, 0.0 }
 0x1c6   :  { %v287_v56 = vmax.f32 %v269_v52, 0.0  ;;  %v397_v57 = vpop.f32.mrb[2].mxu1 }
 0x1c7   :  { %v316_v58 = vmul.f32 %v303_v55, %v288_v54  ;;  %v284_v59 = vadd.f32 %v397_v57, %v188_v48  ;;  %v278_v60 = vpop.f32.mrb[3].mxu1 }
 0x1c8   :  { %v315_v61 = vmul.f32 %v298_v53, %v287_v56  ;;  %v279_v62 = vadd.f32 %v278_v60, %v183_v47 }
 0x1c9   :  { %v290_v0 = vmax.f32 %v284_v59, 0.0 }
 0x1ca   :  { %v319_v63 = vadd.f32 %v316_v58, %v315_v61  ;;  %v289_v1 = vmax.f32 %v279_v62, 0.0 }
 0x1cb   :  { %v318_v5 = vmul.f32 %v313_v4, %v290_v0 }
 0x1cc   :  { %v317_v3 = vmul.f32 %v308_v2, %v289_v1 }
 0x1ce   :  { %v320_v6 = vadd.f32 %v319_v63, %v317_v3 }
 0x1d0   :  { %v321_v7 = vadd.f32 %v320_v6, %v318_v5 }
 0x1d2   :  { %v322_v8 = vrot.slane %v321_v7, 4 }
 0x1d4   :  { %v323_v9 = vadd.f32 %v322_v8, %v321_v7 }
 0x1d6   :  { %v324_v10 = vrot.slane %v323_v9, 2 }
 0x1d8   :  { %v325_v11 = vadd.f32 %v324_v10, %v323_v9 }
 0x1da   :  { %v326_v12 = vrot.slane %v325_v11, 1 }
 0x1dc   :  { %v327_v14 = vadd.f32 %v326_v12, %v325_v11 }
 0x1de   :  { %v330_v15 = vadd.f32 %v329_v13, %v327_v14 }
 0x1e0   :  { %331 = vst [vmem:[#allocation3] sm:$0x1] %v330_v15 }
 0x1e1   :  { %429 = shalt.err (!%p426_p4)
}
 0x1e2   :  { %s430_s26 = scalar_lea.hbm %s586_s7, 16 }
 0x1e3   :  { %p431_p5 = scmp.ne.s32.totalorder %s586_s7, %s430_s26  ;;  %p434_p6 = scmp.lt.u32.totalorder %s430_s26, %s586_s7 }
 0x1e5   :  { %p436_p7 = pnand %p434_p6, %p431_p5 }
 0x1e7   :  { %439 = shalt.err (!%p436_p7)
}
 0x1e8   :  { %341 = dma.vmem_to_hbm [thread:$0]  %s339_s22, 16, %s586_s7, [#allocation4]  }
 0x1e9   :  { %440 = dma.done.wait [#allocation4], 16  }
 0x1ea   :  { %441 = vsyncadd [#allocation4], 4294967280 }
 0x1eb   :  { %345 = vsyncpa [#allocation4], 1 }

</bundles_post_ra>
